<compile_context>
chip_gen: v5e
topology: v5e:2x2
jax: 0.10.0
libtpu: 0.0.40
codegen_flags: <defaults>
</compile_context>

<pallas_src>
import functools
import math

import jax
import jax.numpy as jnp
from jax.experimental import pallas as pl
from jax.experimental.pallas import tpu as pltpu


def _two_pass_fwd_kernel(idx_ref, cand_ref, out_ref, *, pool_size):
    """One batch block, transposed (lane-dense) layout.

    idx_ref : (num_neg,   TB) int32  random pool positions, batch on lanes
    cand_ref: (pool_size, TB) int32  candidate items,        batch on lanes
    out_ref : (num_neg,   TB) int32  sampled negatives,      batch on lanes
    """
    idx = idx_ref[...]
    out = jnp.zeros_like(idx)

    if pool_size <= 64:
        # Static unroll: pure dense VPU compare/select, exact for int32 ids.
        cand = cand_ref[...]
        for p in range(pool_size):
            out = jnp.where(idx == p, cand[p:p + 1, :], out)
    else:
        # Guard against large pool_size: bounded loop, ref-sliced row reads.
        def body(p, acc):
            row = cand_ref[pl.ds(p, 1), :]            # (1, TB)
            return jnp.where(idx == p, row, acc)
        out = jax.lax.fori_loop(0, pool_size, body, out)

    out_ref[...] = out


def _round_up(x, m):
    return ((x + m - 1) // m) * m


def two_pass_forward(pool, user_id, key, num_neg, *, block_batch=256):
    """Pallas equivalent of two_pass.forward(user_id)."""
    num_users, pool_size = pool.shape
    batch = user_id.shape[0]

    pool_i32 = pool if pool.dtype == jnp.int32 else pool.astype(jnp.int32)
    # Clamp user ids (no runtime bounds check on TPU; torch would raise instead).
    uid = jnp.clip(user_id.astype(jnp.int32), 0, num_users - 1)

    # Same distribution as torch.randint(0, pool_size, (batch, num_neg)).
    idx_k = jax.random.randint(key, (batch, num_neg), 0, pool_size,
                               dtype=jnp.int32)

    # Pool row gather once in the wrapper (XLA take); kernel streams dense blocks.
    cand = jnp.take(pool_i32, uid, axis=0)                   # (batch, pool_size)

    # Batch tile: lane axis of every block must be a multiple of 128.
    tb = min(max(block_batch, 128), _round_up(batch, 128))
    tb = _round_up(tb, 128)
    b_pad = _round_up(batch, tb)
    pad = b_pad - batch

    # Transposed, zero-padded, lane-dense slabs (layout plumbing only; padded
    # columns compute harmless values and are sliced away afterwards).
    idx_t = jnp.pad(idx_k, ((0, pad), (0, 0))).T             # (num_neg,   b_pad)
    cand_t = jnp.pad(cand, ((0, pad), (0, 0))).T             # (pool_size, b_pad)

    kernel = functools.partial(_two_pass_fwd_kernel, pool_size=pool_size)

    neg_t = pl.pallas_call(
        kernel,
        out_shape=jax.ShapeDtypeStruct((num_neg, b_pad), jnp.int32),
        grid_spec=pltpu.PrefetchScalarGridSpec(
            num_scalar_prefetch=0,
            grid=(b_pad // tb,),
            in_specs=[
                pl.BlockSpec((num_neg, tb), lambda i: (0, i)),
                pl.BlockSpec((pool_size, tb), lambda i: (0, i)),
            ],
            out_specs=pl.BlockSpec((num_neg, tb), lambda i: (0, i)),
        ),
        compiler_params=pltpu.CompilerParams(
            dimension_semantics=("parallel",),   # shards blocked batch across TCs
        ),
    )(idx_t, cand_t)

    neg_items = neg_t.T[:batch]                               # (batch, num_neg)
    # log_q is a compile-time constant; no reason to burn a kernel output on it.
    log_q = jnp.full((batch, num_neg), -math.log(float(pool_size)),
                     dtype=jnp.float32)
    return neg_items, log_q


if __name__ == "__main__":
    # Small, deterministic setup consistent with the module's __init__.
    NUM_USERS = 32
    NUM_ITEMS = 100
    POOL_SIZE = 16
    NUM_NEG = 8
    BATCH = 8

    key = jax.random.PRNGKey(0)
    k_uid, k_idx = jax.random.split(key, 2)

    # Deterministic synthetic pool (stands in for the state update_pool builds).
    pool = (
        jnp.arange(NUM_USERS * POOL_SIZE, dtype=jnp.int32) * 7 % NUM_ITEMS
    ).reshape(NUM_USERS, POOL_SIZE)

    user_id = jax.random.randint(k_uid, (BATCH,), 0, NUM_USERS, dtype=jnp.int32)

    neg_items, log_q = two_pass_forward(pool, user_id, k_idx, NUM_NEG)
    jax.block_until_ready((neg_items, log_q))

    # Sanity checks against the reference semantics.
    assert neg_items.shape == (BATCH, NUM_NEG) and neg_items.dtype == jnp.int32
    assert log_q.shape == (BATCH, NUM_NEG) and log_q.dtype == jnp.float32

    # Exact reference: same idx_k stream, pure-JAX gather.
    idx_ref = jax.random.randint(k_idx, (BATCH, NUM_NEG), 0, POOL_SIZE,
                                 dtype=jnp.int32)
    expected = jnp.take_along_axis(pool[user_id], idx_ref, axis=1)
    assert bool((neg_items == expected).all())

    # Every sampled item must come from that user's pool row.
    cand_ref = pool[user_id]
    in_pool = (neg_items[:, :, None] == cand_ref[:, None, :]).any(-1)
    assert bool(in_pool.all())
    assert bool(jnp.allclose(log_q, -jnp.log(float(POOL_SIZE))))

    print("KERNEL_OK")
</pallas_src>

<mosaic_0001>
module attributes {stable_mosaic.version = 11 : i64} {
  func.func @_two_pass_fwd_kernel(%arg0: i32, %arg1: memref<8x128xi32, #tpu.memory_space<vmem>>, %arg2: memref<16x128xi32, #tpu.memory_space<vmem>>, %arg3: memref<8x128xi32, #tpu.memory_space<vmem>>) attributes {dimension_semantics = [#tpu.dimension_semantics<parallel>], iteration_bounds = array<i64: 1>, scalar_prefetch = 0 : i64, scratch_operands = 0 : i64, tpu.core_type = #tpu.core_type<tc>, window_params = [{transform_indices = @transform_0, window_bounds = array<i64: 8, 128>}, {transform_indices = @transform_1, window_bounds = array<i64: 16, 128>}, {transform_indices = @transform_2, window_bounds = array<i64: 8, 128>}]} {
    %c0 = arith.constant 0 : index
    %c0_0 = arith.constant 0 : index
    %0 = vector.load %arg1[%c0, %c0_0] : memref<8x128xi32, #tpu.memory_space<vmem>>, vector<8x128xi32>
    %c0_i32 = arith.constant 0 : i32
    %1 = vector.broadcast %c0_i32 : i32 to vector<8x128xi32>
    %c0_1 = arith.constant 0 : index
    %c0_2 = arith.constant 0 : index
    %2 = vector.load %arg2[%c0_1, %c0_2] : memref<16x128xi32, #tpu.memory_space<vmem>>, vector<16x128xi32>
    %c0_i32_3 = arith.constant 0 : i32
    %3 = vector.broadcast %c0_i32_3 : i32 to vector<8x128xi32>
    %4 = arith.cmpi eq, %0, %3 : vector<8x128xi32>
    %5 = vector.extract_strided_slice %2 {offsets = [0, 0], sizes = [1, 128], strides = [1, 1]} : vector<16x128xi32> to vector<1x128xi32>
    %6 = vector.shape_cast %5 : vector<1x128xi32> to vector<1x128xi32>
    %7 = vector.broadcast %6 : vector<1x128xi32> to vector<8x128xi32>
    %8 = arith.select %4, %7, %1 : vector<8x128xi1>, vector<8x128xi32>
    %c1_i32 = arith.constant 1 : i32
    %9 = vector.broadcast %c1_i32 : i32 to vector<8x128xi32>
    %10 = arith.cmpi eq, %0, %9 : vector<8x128xi32>
    %11 = vector.extract_strided_slice %2 {offsets = [1, 0], sizes = [1, 128], strides = [1, 1]} : vector<16x128xi32> to vector<1x128xi32>
    %12 = vector.shape_cast %11 : vector<1x128xi32> to vector<1x128xi32>
    %13 = vector.broadcast %12 : vector<1x128xi32> to vector<8x128xi32>
    %14 = arith.select %10, %13, %8 : vector<8x128xi1>, vector<8x128xi32>
    %c2_i32 = arith.constant 2 : i32
    %15 = vector.broadcast %c2_i32 : i32 to vector<8x128xi32>
    %16 = arith.cmpi eq, %0, %15 : vector<8x128xi32>
    %17 = vector.extract_strided_slice %2 {offsets = [2, 0], sizes = [1, 128], strides = [1, 1]} : vector<16x128xi32> to vector<1x128xi32>
    %18 = vector.shape_cast %17 : vector<1x128xi32> to vector<1x128xi32>
    %19 = vector.broadcast %18 : vector<1x128xi32> to vector<8x128xi32>
    %20 = arith.select %16, %19, %14 : vector<8x128xi1>, vector<8x128xi32>
    %c3_i32 = arith.constant 3 : i32
    %21 = vector.broadcast %c3_i32 : i32 to vector<8x128xi32>
    %22 = arith.cmpi eq, %0, %21 : vector<8x128xi32>
    %23 = vector.extract_strided_slice %2 {offsets = [3, 0], sizes = [1, 128], strides = [1, 1]} : vector<16x128xi32> to vector<1x128xi32>
    %24 = vector.shape_cast %23 : vector<1x128xi32> to vector<1x128xi32>
    %25 = vector.broadcast %24 : vector<1x128xi32> to vector<8x128xi32>
    %26 = arith.select %22, %25, %20 : vector<8x128xi1>, vector<8x128xi32>
    %c4_i32 = arith.constant 4 : i32
    %27 = vector.broadcast %c4_i32 : i32 to vector<8x128xi32>
    %28 = arith.cmpi eq, %0, %27 : vector<8x128xi32>
    %29 = vector.extract_strided_slice %2 {offsets = [4, 0], sizes = [1, 128], strides = [1, 1]} : vector<16x128xi32> to vector<1x128xi32>
    %30 = vector.shape_cast %29 : vector<1x128xi32> to vector<1x128xi32>
    %31 = vector.broadcast %30 : vector<1x128xi32> to vector<8x128xi32>
    %32 = arith.select %28, %31, %26 : vector<8x128xi1>, vector<8x128xi32>
    %c5_i32 = arith.constant 5 : i32
    %33 = vector.broadcast %c5_i32 : i32 to vector<8x128xi32>
    %34 = arith.cmpi eq, %0, %33 : vector<8x128xi32>
    %35 = vector.extract_strided_slice %2 {offsets = [5, 0], sizes = [1, 128], strides = [1, 1]} : vector<16x128xi32> to vector<1x128xi32>
    %36 = vector.shape_cast %35 : vector<1x128xi32> to vector<1x128xi32>
    %37 = vector.broadcast %36 : vector<1x128xi32> to vector<8x128xi32>
    %38 = arith.select %34, %37, %32 : vector<8x128xi1>, vector<8x128xi32>
    %c6_i32 = arith.constant 6 : i32
    %39 = vector.broadcast %c6_i32 : i32 to vector<8x128xi32>
    %40 = arith.cmpi eq, %0, %39 : vector<8x128xi32>
    %41 = vector.extract_strided_slice %2 {offsets = [6, 0], sizes = [1, 128], strides = [1, 1]} : vector<16x128xi32> to vector<1x128xi32>
    %42 = vector.shape_cast %41 : vector<1x128xi32> to vector<1x128xi32>
    %43 = vector.broadcast %42 : vector<1x128xi32> to vector<8x128xi32>
    %44 = arith.select %40, %43, %38 : vector<8x128xi1>, vector<8x128xi32>
    %c7_i32 = arith.constant 7 : i32
    %45 = vector.broadcast %c7_i32 : i32 to vector<8x128xi32>
    %46 = arith.cmpi eq, %0, %45 : vector<8x128xi32>
    %47 = vector.extract_strided_slice %2 {offsets = [7, 0], sizes = [1, 128], strides = [1, 1]} : vector<16x128xi32> to vector<1x128xi32>
    %48 = vector.shape_cast %47 : vector<1x128xi32> to vector<1x128xi32>
    %49 = vector.broadcast %48 : vector<1x128xi32> to vector<8x128xi32>
    %50 = arith.select %46, %49, %44 : vector<8x128xi1>, vector<8x128xi32>
    %c8_i32 = arith.constant 8 : i32
    %51 = vector.broadcast %c8_i32 : i32 to vector<8x128xi32>
    %52 = arith.cmpi eq, %0, %51 : vector<8x128xi32>
    %53 = vector.extract_strided_slice %2 {offsets = [8, 0], sizes = [1, 128], strides = [1, 1]} : vector<16x128xi32> to vector<1x128xi32>
    %54 = vector.shape_cast %53 : vector<1x128xi32> to vector<1x128xi32>
    %55 = vector.broadcast %54 : vector<1x128xi32> to vector<8x128xi32>
    %56 = arith.select %52, %55, %50 : vector<8x128xi1>, vector<8x128xi32>
    %c9_i32 = arith.constant 9 : i32
    %57 = vector.broadcast %c9_i32 : i32 to vector<8x128xi32>
    %58 = arith.cmpi eq, %0, %57 : vector<8x128xi32>
    %59 = vector.extract_strided_slice %2 {offsets = [9, 0], sizes = [1, 128], strides = [1, 1]} : vector<16x128xi32> to vector<1x128xi32>
    %60 = vector.shape_cast %59 : vector<1x128xi32> to vector<1x128xi32>
    %61 = vector.broadcast %60 : vector<1x128xi32> to vector<8x128xi32>
    %62 = arith.select %58, %61, %56 : vector<8x128xi1>, vector<8x128xi32>
    %c10_i32 = arith.constant 10 : i32
    %63 = vector.broadcast %c10_i32 : i32 to vector<8x128xi32>
    %64 = arith.cmpi eq, %0, %63 : vector<8x128xi32>
    %65 = vector.extract_strided_slice %2 {offsets = [10, 0], sizes = [1, 128], strides = [1, 1]} : vector<16x128xi32> to vector<1x128xi32>
    %66 = vector.shape_cast %65 : vector<1x128xi32> to vector<1x128xi32>
    %67 = vector.broadcast %66 : vector<1x128xi32> to vector<8x128xi32>
    %68 = arith.select %64, %67, %62 : vector<8x128xi1>, vector<8x128xi32>
    %c11_i32 = arith.constant 11 : i32
    %69 = vector.broadcast %c11_i32 : i32 to vector<8x128xi32>
    %70 = arith.cmpi eq, %0, %69 : vector<8x128xi32>
    %71 = vector.extract_strided_slice %2 {offsets = [11, 0], sizes = [1, 128], strides = [1, 1]} : vector<16x128xi32> to vector<1x128xi32>
    %72 = vector.shape_cast %71 : vector<1x128xi32> to vector<1x128xi32>
    %73 = vector.broadcast %72 : vector<1x128xi32> to vector<8x128xi32>
    %74 = arith.select %70, %73, %68 : vector<8x128xi1>, vector<8x128xi32>
    %c12_i32 = arith.constant 12 : i32
    %75 = vector.broadcast %c12_i32 : i32 to vector<8x128xi32>
    %76 = arith.cmpi eq, %0, %75 : vector<8x128xi32>
    %77 = vector.extract_strided_slice %2 {offsets = [12, 0], sizes = [1, 128], strides = [1, 1]} : vector<16x128xi32> to vector<1x128xi32>
    %78 = vector.shape_cast %77 : vector<1x128xi32> to vector<1x128xi32>
    %79 = vector.broadcast %78 : vector<1x128xi32> to vector<8x128xi32>
    %80 = arith.select %76, %79, %74 : vector<8x128xi1>, vector<8x128xi32>
    %c13_i32 = arith.constant 13 : i32
    %81 = vector.broadcast %c13_i32 : i32 to vector<8x128xi32>
    %82 = arith.cmpi eq, %0, %81 : vector<8x128xi32>
    %83 = vector.extract_strided_slice %2 {offsets = [13, 0], sizes = [1, 128], strides = [1, 1]} : vector<16x128xi32> to vector<1x128xi32>
    %84 = vector.shape_cast %83 : vector<1x128xi32> to vector<1x128xi32>
    %85 = vector.broadcast %84 : vector<1x128xi32> to vector<8x128xi32>
    %86 = arith.select %82, %85, %80 : vector<8x128xi1>, vector<8x128xi32>
    %c14_i32 = arith.constant 14 : i32
    %87 = vector.broadcast %c14_i32 : i32 to vector<8x128xi32>
    %88 = arith.cmpi eq, %0, %87 : vector<8x128xi32>
    %89 = vector.extract_strided_slice %2 {offsets = [14, 0], sizes = [1, 128], strides = [1, 1]} : vector<16x128xi32> to vector<1x128xi32>
    %90 = vector.shape_cast %89 : vector<1x128xi32> to vector<1x128xi32>
    %91 = vector.broadcast %90 : vector<1x128xi32> to vector<8x128xi32>
    %92 = arith.select %88, %91, %86 : vector<8x128xi1>, vector<8x128xi32>
    %c15_i32 = arith.constant 15 : i32
    %93 = vector.broadcast %c15_i32 : i32 to vector<8x128xi32>
    %94 = arith.cmpi eq, %0, %93 : vector<8x128xi32>
    %95 = vector.extract_strided_slice %2 {offsets = [15, 0], sizes = [1, 128], strides = [1, 1]} : vector<16x128xi32> to vector<1x128xi32>
    %96 = vector.shape_cast %95 : vector<1x128xi32> to vector<1x128xi32>
    %97 = vector.broadcast %96 : vector<1x128xi32> to vector<8x128xi32>
    %98 = arith.select %94, %97, %92 : vector<8x128xi1>, vector<8x128xi32>
    %c0_4 = arith.constant 0 : index
    %c0_5 = arith.constant 0 : index
    %99 = vector.load %arg3[%c0_4, %c0_5] : memref<8x128xi32, #tpu.memory_space<vmem>>, vector<8x128xi32>
    tpu.vector_store %arg3[%c0_4, %c0_5], %98 {strides = array<i32>} : memref<8x128xi32, #tpu.memory_space<vmem>>, vector<8x128xi32>,
    return
  }
  func.func @transform_0(%arg0: i32) -> (i32, i32) {
    %c0_i32 = arith.constant 0 : i32
    %c0_i32_0 = arith.constant 0 : i32
    return %c0_i32, %arg0 : i32, i32
  }
  func.func @transform_1(%arg0: i32) -> (i32, i32) {
    %c0_i32 = arith.constant 0 : i32
    %c0_i32_0 = arith.constant 0 : i32
    return %c0_i32, %arg0 : i32, i32
  }
  func.func @transform_2(%arg0: i32) -> (i32, i32) {
    %c0_i32 = arith.constant 0 : i32
    %c0_i32_0 = arith.constant 0 : i32
    return %c0_i32, %arg0 : i32, i32
  }
}

</mosaic_0001>

<bundles_post_ra>
// kernel: tpu_custom_call.1
= control target key start
LH: loop header
LB: loop body
LE: loop exit
PB: predicated region body
PF: predicated region fallthrough
CT: control target
= control target key end

     0   :  { %7 = vsyncpa [#allocation3], 0  ;;  %s224_s0 = inlined_call_operand.hbm [shape: s32[8,128], index: 0, kind: input, shape index: {}]   ;;  %s225_s1 = inlined_call_operand.hbm [shape: s32[16,128], index: 1, kind: input, shape index: {}]   ;;  %s226_s2 = inlined_call_operand.hbm [shape: s32[8,128], index: 2, kind: output, shape index: {}]  }
   0x1   :  { %8 = vsyncpa [#allocation6], 0 }
   0x2   :  { %9 = vsyncpa [#allocation4], 0  ;;  %s15_s11 = sshll.u32 %s224_s0, 4  ;;  %s195_s12 = smov [#allocation2]   ;;  %s16_s11 = int_to_ptr.hbm [resolvable:$true] %s15_s11 }
   0x3   :  { %s17_s13 = sshll.u32 %s195_s12, 4  ;;  %s25_s16 = sshll.u32 %s225_s1, 4  ;;  %s18_s13 = int_to_ptr.vmem [resolvable:$true] %s17_s13  ;;  %s26_s16 = int_to_ptr.hbm [resolvable:$true] %s25_s16 }
   0x4   :  { %20 = dma.hbm_to_vmem [thread:$0]  %s16_s11, 128, %s18_s13, [#allocation3]  }
   0x5   :  { %s196_s17 = smov [#allocation5]   ;;  %s197_s19 = smov 128  }
   0x6   :  { %s27_s18 = sshll.u32 %s196_s17, 4  ;;  %s198_s20 = smov 8   ;;  %s28_s18 = int_to_ptr.vmem [resolvable:$true] %s27_s18 }
   0x7   :  { %33 = dma.hbm_to_vmem [thread:$0]  %s26_s16, 256, %s28_s18, [#allocation6], %s197_s19, %s197_s19, %s198_s20  }
   0x8   :  { %189 = dma.done.wait [#allocation3], 128  }
   0x9   :  { %190 = vsyncadd [#allocation3], 4294967168 }
   0xa   :  { %191 = dma.done.wait [#allocation6], 256  }
   0xb   :  { %192 = vsyncadd [#allocation6], 4294967040  ;;  %v42_v0 = vld [vmem:[#allocation2] sm:$0xff]  ;;  %v43_v1 = vld [vmem:[#allocation5] sm:$0xff]  ;;  %s199_s0 = smov [#allocation7]   ;;  %s101_s23 = sshll.u32 %s226_s2, 4  ;;  %s102_s23 = int_to_ptr.hbm [resolvable:$true] %s101_s23 }
   0xc   :  { %vm45_vm0 = vcmp.eq.s32.totalorder %v42_v0, 0  ;;  %v46_v2 = vperm.slane %v43_v1, 0  ;;  %vm48_vm1 = vcmp.eq.s32.totalorder %v42_v0, 1  ;;  %v49_v3 = vperm.slane %v43_v1, 1  ;;  %v44_v8 = vld [vmem:[#allocation5 + $0x8] sm:$0xff]  ;;  %s99_s1 = sshll.u32 %s199_s0, 4  ;;  %s100_s1 = int_to_ptr.vmem [resolvable:$true] %s99_s1 }
   0xd   :  { %vm51_vm2 = vcmp.eq.s32.totalorder %v42_v0, 2  ;;  %v52_v4 = vperm.slane %v43_v1, 2  ;;  %v55_v5 = vperm.slane %v43_v1, 3  ;;  %vm54_vm3 = vcmp.eq.s32.totalorder %v42_v0, 3 }
   0xe   :  { %v47_v6 = vsel %vm45_vm0, %v46_v2, 0  ;;  %v58_v7 = vperm.slane %v43_v1, 4  ;;  %vm57_vm4 = vcmp.eq.s32.totalorder %v42_v0, 4  ;;  %v61_v10 = vperm.slane %v43_v1, 5 }
   0xf   :  { %v50_v9 = vsel %vm48_vm1, %v49_v3, %v47_v6  ;;  %vm60_vm5 = vcmp.eq.s32.totalorder %v42_v0, 5  ;;  %v64_v12 = vperm.slane %v43_v1, 6  ;;  %vm63_vm6 = vcmp.eq.s32.totalorder %v42_v0, 6 }
  0x10   :  { %v53_v11 = vsel %vm51_vm2, %v52_v4, %v50_v9  ;;  %v67_v14 = vperm.slane %v43_v1, 7  ;;  %vm66_vm7 = vcmp.eq.s32.totalorder %v42_v0, 7  ;;  %v70_v16 = vperm.slane %v44_v8, 0 }
  0x11   :  { %v56_v13 = vsel %vm54_vm3, %v55_v5, %v53_v11  ;;  %vm69_vm8 = vcmp.eq.s32.totalorder %v42_v0, 8  ;;  %v73_v18 = vperm.slane %v44_v8, 1  ;;  %vm72_vm9 = vcmp.eq.s32.totalorder %v42_v0, 9 }
  0x12   :  { %v59_v15 = vsel %vm57_vm4, %v58_v7, %v56_v13  ;;  %v76_v20 = vperm.slane %v44_v8, 2  ;;  %vm75_vm10 = vcmp.eq.s32.totalorder %v42_v0, 10  ;;  %v79_v22 = vperm.slane %v44_v8, 3 }
  0x13   :  { %v62_v17 = vsel %vm60_vm5, %v61_v10, %v59_v15  ;;  %vm78_vm11 = vcmp.eq.s32.totalorder %v42_v0, 11  ;;  %v82_v24 = vperm.slane %v44_v8, 4  ;;  %vm81_vm12 = vcmp.eq.s32.totalorder %v42_v0, 12 }
  0x14   :  { %v65_v19 = vsel %vm63_vm6, %v64_v12, %v62_v17  ;;  %v85_v26 = vperm.slane %v44_v8, 5  ;;  %vm84_vm13 = vcmp.eq.s32.totalorder %v42_v0, 13  ;;  %v88_v28 = vperm.slane %v44_v8, 6 }
  0x15   :  { %v68_v21 = vsel %vm66_vm7, %v67_v14, %v65_v19  ;;  %vm87_vm14 = vcmp.eq.s32.totalorder %v42_v0, 14  ;;  %v91_v30 = vperm.slane %v44_v8, 7  ;;  %vm90_vm15 = vcmp.eq.s32.totalorder %v42_v0, 15 }
  0x16   :  { %v71_v23 = vsel %vm69_vm8, %v70_v16, %v68_v21 }
  0x17   :  { %v74_v25 = vsel %vm72_vm9, %v73_v18, %v71_v23 }
  0x18   :  { %v77_v27 = vsel %vm75_vm10, %v76_v20, %v74_v25 }
  0x19   :  { %v80_v29 = vsel %vm78_vm11, %v79_v22, %v77_v27 }
  0x1a   :  { %v83_v31 = vsel %vm81_vm12, %v82_v24, %v80_v29 }
  0x1b   :  { %v86_v32 = vsel %vm84_vm13, %v85_v26, %v83_v31 }
  0x1c   :  { %v89_v33 = vsel %vm87_vm14, %v88_v28, %v86_v32 }
  0x1d   :  { %v92_v34 = vsel %vm90_vm15, %v91_v30, %v89_v33 }
  0x1e   :  { %93 = vst [vmem:[#allocation7] sm:$0xff] %v92_v34 }
  0x1f   :  { %104 = dma.vmem_to_hbm [thread:$0]  %s100_s1, 128, %s102_s23, [#allocation4]  }
  0x20   :  { %193 = dma.done.wait [#allocation4], 128  }
  0x21   :  { %194 = vsyncadd [#allocation4], 4294967168 }
  0x22   :  { %109 = vsyncpa [#allocation3], 1 }
  0x23   :  { %110 = vsyncpa [#allocation6], 1 }
  0x24   :  { %111 = vsyncpa [#allocation4], 1 }

</bundles_post_ra>
